<compile_context>
chip_gen: v5e
topology: v5e:2x2
jax: 0.10.0
libtpu: 0.0.40
codegen_flags: <defaults>
</compile_context>

<pallas_src>
import functools
import math

import jax
import jax.numpy as jnp
from jax.experimental import pallas as pl
from jax.experimental.pallas import tpu as pltpu


# ---------------------------------------------------------------------------
# Kernel 1: fused Q/K/V input projections (weights VMEM-resident).
# ---------------------------------------------------------------------------
def _qkv_proj_kernel(q_ref, k_ref, v_ref,
                     wq_ref, bq_ref, wk_ref, bk_ref, wv_ref, bv_ref,
                     qp_ref, kp_ref, vp_ref, *, scale, compute_dtype):
    cd = compute_dtype
    q = q_ref[0].astype(cd)                                   # (ts, D)
    k = k_ref[0].astype(cd)
    v = v_ref[0].astype(cd)
    qp = jnp.dot(q, wq_ref[...], preferred_element_type=jnp.float32) + bq_ref[...]
    qp_ref[0] = (qp * scale).astype(qp_ref.dtype)             # fold 1/sqrt(dk)
    kp = jnp.dot(k, wk_ref[...], preferred_element_type=jnp.float32) + bk_ref[...]
    kp_ref[0] = kp.astype(kp_ref.dtype)
    vp = jnp.dot(v, wv_ref[...], preferred_element_type=jnp.float32) + bv_ref[...]
    vp_ref[0] = vp.astype(vp_ref.dtype)


# ---------------------------------------------------------------------------
# Kernel 2: flash attention over head groups + fused output projection.
# ---------------------------------------------------------------------------
def _attn_body(qp_ref, kp_ref, vp_ref, wo_ref, bo_ref, out_ref, attn_ref,
               m_sc, l_sc, acc_sc, out_acc, *, hb, dk, compute_dtype):
    """One grid step: (batch b, q-tile qi, head-group g, kv-tile kv)."""
    g = pl.program_id(2)
    kv = pl.program_id(3)
    g_last = pl.num_programs(2) - 1
    kv_last = pl.num_programs(3) - 1

    # Zero the output-projection accumulator once per (b, qi).
    @pl.when((g == 0) & (kv == 0))
    def _init_out():
        out_acc[...] = jnp.zeros(out_acc.shape, out_acc.dtype)

    # Reset the per-group online-softmax state at the first KV tile.
    @pl.when(kv == 0)
    def _init_group():
        m_sc[...] = jnp.full(m_sc.shape, -jnp.inf, m_sc.dtype)
        l_sc[...] = jnp.zeros(l_sc.shape, l_sc.dtype)
        acc_sc[...] = jnp.zeros(acc_sc.shape, acc_sc.dtype)

    q_blk = qp_ref[0]                         # (tq, hb*dk) — already scaled
    k_blk = kp_ref[0]                         # (tk, hb*dk)
    v_blk = vp_ref[0]                         # (tk, hb*dk)

    p_heads = []
    for h in range(hb):                       # static unroll over heads in group
        qh = q_blk[:, h * dk:(h + 1) * dk]    # (tq, dk)
        kh = k_blk[:, h * dk:(h + 1) * dk]    # (tk, dk)
        vh = v_blk[:, h * dk:(h + 1) * dk]    # (tk, dk)

        # Scores (tq, tk): contract dk without materializing a transpose.
        s = jax.lax.dot_general(qh, kh,
                                dimension_numbers=(((1,), (1,)), ((), ())),
                                preferred_element_type=jnp.float32)

        # Online softmax update (f32 on the VPU / EUP).
        m_prev = m_sc[h]
        m_new = jnp.maximum(m_prev, jnp.max(s, axis=-1, keepdims=True))
        alpha = jnp.exp(m_prev - m_new)
        p = jnp.exp(s - m_new)                                 # (tq, tk) f32
        l_sc[h] = alpha * l_sc[h] + jnp.sum(p, axis=-1, keepdims=True)
        m_sc[h] = m_new
        pv = jnp.dot(p.astype(compute_dtype), vh,
                     preferred_element_type=jnp.float32)       # (tq, dk)
        acc_sc[h] = alpha * acc_sc[h] + pv
        if attn_ref is not None:
            p_heads.append(p)

    # Finalize this head group: normalize and do one wide out-proj matmul
    # ((tq, hb*dk) @ (hb*dk, D)) accumulating into the (tq, D) output.
    @pl.when(kv == kv_last)
    def _finish_group():
        ctx_parts = []
        for h in range(hb):
            inv_l = pl.reciprocal(l_sc[h], approx=True)        # EUP slot
            ctx_parts.append(acc_sc[h] * inv_l)                # (tq, dk) f32
        ctx = jnp.concatenate(ctx_parts, axis=-1)              # (tq, hb*dk)
        out_acc[...] += jnp.dot(ctx.astype(compute_dtype), wo_ref[0],
                                preferred_element_type=jnp.float32)
        if attn_ref is not None:
            # Exact divide for the user-visible weights (rows sum to 1).
            # Exact only because the debug path forces a single KV tile.
            for h in range(hb):
                attn_ref[0, h] = (p_heads[h] / l_sc[h]).astype(attn_ref.dtype)

    # Final write-back of the (b, qi) output tile after the last head group.
    @pl.when((g == g_last) & (kv == kv_last))
    def _write_out():
        out_ref[0] = (out_acc[...] + bo_ref[...]).astype(out_ref.dtype)


def _attn_kernel_attn(qp_ref, kp_ref, vp_ref, wo_ref, bo_ref, out_ref, attn_ref,
                      m_sc, l_sc, acc_sc, out_acc, *, hb, dk, compute_dtype):
    _attn_body(qp_ref, kp_ref, vp_ref, wo_ref, bo_ref, out_ref, attn_ref,
               m_sc, l_sc, acc_sc, out_acc,
               hb=hb, dk=dk, compute_dtype=compute_dtype)


def _attn_kernel_noattn(qp_ref, kp_ref, vp_ref, wo_ref, bo_ref, out_ref,
                        m_sc, l_sc, acc_sc, out_acc, *, hb, dk, compute_dtype):
    _attn_body(qp_ref, kp_ref, vp_ref, wo_ref, bo_ref, out_ref, None,
               m_sc, l_sc, acc_sc, out_acc,
               hb=hb, dk=dk, compute_dtype=compute_dtype)


# ---------------------------------------------------------------------------
# Helpers.
# ---------------------------------------------------------------------------
def _pick_heads_per_group(H, dk, D):
    """Smallest head group whose lane width (hb*dk) is a multiple of 128;
    otherwise put all heads in one group (lane width == D, always legal)."""
    for hb in range(1, H + 1):
        if H % hb == 0 and (hb * dk) % 128 == 0:
            return hb
    return H


def _derive_vmem_limit(block_bytes, scratch_bytes):
    """Shape-derived VMEM limit (review feedback): inputs/outputs are
    double-buffered by the BlockSpec pipeline.  Portable across 64 MiB (v7x)
    and 128 MiB (v5e/v6e) parts; keep tiles <= 256 on v7x with resident weights."""
    need = 2 * block_bytes + scratch_bytes + (4 << 20)
    return int(min(max(need, 32 << 20), 112 << 20))


# ---------------------------------------------------------------------------
# Public wrapper.
# ---------------------------------------------------------------------------
def multi_head_attention(q, k, v, params, *, num_heads,
                         return_attn=True, q_tile=None, kv_tile=None,
                         seq_tile=None, heads_per_group=None,
                         mxu_dtype=jnp.bfloat16, attn_dtype=None):
    """q, k, v: [B, S, D]; params: dict of [D_in, D_out] weights and [D] biases."""
    B, S, D = q.shape
    H = num_heads
    assert D % H == 0, "d_model must be divisible by num_heads"
    dk = D // H
    scale = 1.0 / math.sqrt(dk)

    # --- tiling / head-group selection -------------------------------------
    # Defaults: 256 tiles (sweep 256/512 on v6e's 128 MiB VMEM, keep 128 on v5e,
    # budget-check 256 on v7x's 64 MiB).
    tq = min(q_tile or 256, S)
    assert S % tq == 0 and (tq % 8 == 0 or tq == S), "bad q_tile"
    if return_attn:
        # Debug-only path: exact [B,H,S,S] softmax needs the whole key axis in
        # one tile; guard against long sequences (O(S^2) VMEM/HBM).
        assert kv_tile is None or kv_tile == S
        assert S <= 4096, "return_attn=True is a debug-only path for short S"
        tk = S
    else:
        tk = min(kv_tile or 256, S)
        assert S % tk == 0 and (tk % 8 == 0 or tk == S), "bad kv_tile"
    n_q, n_kv = S // tq, S // tk

    hb = heads_per_group or _pick_heads_per_group(H, dk, D)
    assert H % hb == 0
    hd = hb * dk
    assert hd % 128 == 0 or hd == D, \
        "heads_per_group * d_k must be a multiple of 128 (or cover all heads)"
    G = H // hb

    ts = min(seq_tile or 256, S)
    assert S % ts == 0 and (ts % 8 == 0 or ts == S), "bad seq_tile"

    # --- parameter layout (done once, outside the kernels) -----------------
    f32 = jnp.float32
    wq = params['wq'].astype(mxu_dtype)                       # [D, D]
    wk = params['wk'].astype(mxu_dtype)
    wv = params['wv'].astype(mxu_dtype)
    wo_g = params['wo'].reshape(G, hd, D).astype(mxu_dtype)   # per head-group rows
    bq = params['bq'].reshape(1, D).astype(f32)
    bk = params['bk'].reshape(1, D).astype(f32)
    bv = params['bv'].reshape(1, D).astype(f32)
    bo = params['bo'].reshape(1, D).astype(f32)

    qa = q.astype(mxu_dtype)
    ka = k.astype(mxu_dtype)
    va = v.astype(mxu_dtype)

    isz = jnp.dtype(mxu_dtype).itemsize

    # --- 1) Q/K/V projection GEMM kernel (weights VMEM-resident) -----------
    seq_spec = pl.BlockSpec((1, ts, D), lambda b, si: (b, si, 0))
    w_spec = pl.BlockSpec((D, D), lambda b, si: (0, 0))       # constant -> resident
    b_spec = pl.BlockSpec((1, D), lambda b, si: (0, 0))

    proj_block_bytes = (6 * ts * D + 3 * D * D) * isz + 3 * D * 4
    proj_vmem = _derive_vmem_limit(proj_block_bytes, 0)

    qp, kp, vp = pl.pallas_call(
        functools.partial(_qkv_proj_kernel, scale=scale, compute_dtype=mxu_dtype),
        out_shape=tuple(jax.ShapeDtypeStruct((B, S, D), mxu_dtype)
                        for _ in range(3)),
        grid_spec=pltpu.PrefetchScalarGridSpec(
            num_scalar_prefetch=0,
            grid=(B, S // ts),
            in_specs=[seq_spec, seq_spec, seq_spec,
                      w_spec, b_spec, w_spec, b_spec, w_spec, b_spec],
            out_specs=(seq_spec, seq_spec, seq_spec),
        ),
        compiler_params=pltpu.CompilerParams(
            dimension_semantics=("parallel", "parallel"),
            vmem_limit_bytes=proj_vmem),
    )(qa, ka, va, wq, bq, wk, bk, wv, bv)

    # --- 2) flash attention over head groups + output projection -----------
    grid = (B, n_q, G, n_kv)

    in_specs = [
        pl.BlockSpec((1, tq, hd), lambda b, qi, g, kv: (b, qi, g)),   # qp group
        pl.BlockSpec((1, tk, hd), lambda b, qi, g, kv: (b, kv, g)),   # kp group
        pl.BlockSpec((1, tk, hd), lambda b, qi, g, kv: (b, kv, g)),   # vp group
        pl.BlockSpec((1, hd, D), lambda b, qi, g, kv: (g, 0, 0)),     # wo group rows
        pl.BlockSpec((1, D), lambda b, qi, g, kv: (0, 0)),            # bo
    ]
    out_spec_o = pl.BlockSpec((1, tq, D), lambda b, qi, g, kv: (b, qi, 0))

    scratch_shapes = [
        pltpu.VMEM((hb, tq, 1), jnp.float32),   # running max m (per head)
        pltpu.VMEM((hb, tq, 1), jnp.float32),   # running denom l (per head)
        pltpu.VMEM((hb, tq, dk), jnp.float32),  # per-head context accumulators
        pltpu.VMEM((tq, D), jnp.float32),       # out-proj accumulator over groups
    ]

    a_dtype = attn_dtype or q.dtype
    attn_block_bytes = (tq * hd + 2 * tk * hd + hd * D) * isz + D * 4 \
        + tq * D * jnp.dtype(q.dtype).itemsize
    if return_attn:
        attn_block_bytes += hb * tq * tk * jnp.dtype(a_dtype).itemsize
    attn_scratch_bytes = (2 * hb * tq + hb * tq * dk + tq * D) * 4
    attn_vmem = _derive_vmem_limit(attn_block_bytes, attn_scratch_bytes)

    if return_attn:
        out_shape = (jax.ShapeDtypeStruct((B, S, D), q.dtype),
                     jax.ShapeDtypeStruct((B, H, S, S), a_dtype))
        out_specs = (out_spec_o,
                     pl.BlockSpec((1, hb, tq, tk),
                                  lambda b, qi, g, kv: (b, g, qi, kv)))
        kernel_fn = _attn_kernel_attn
    else:
        out_shape = jax.ShapeDtypeStruct((B, S, D), q.dtype)
        out_specs = out_spec_o
        kernel_fn = _attn_kernel_noattn

    kernel = functools.partial(kernel_fn, hb=hb, dk=dk, compute_dtype=mxu_dtype)

    result = pl.pallas_call(
        kernel,
        out_shape=out_shape,
        grid_spec=pltpu.PrefetchScalarGridSpec(
            num_scalar_prefetch=0,
            grid=grid,
            in_specs=in_specs,
            out_specs=out_specs,
            scratch_shapes=scratch_shapes,
        ),
        compiler_params=pltpu.CompilerParams(
            # B and n_q shard across TensorCores on v7x (keep B*n_q >= 2);
            # head-group and KV axes are sequential reductions.
            dimension_semantics=("parallel", "parallel", "arbitrary", "arbitrary"),
            vmem_limit_bytes=attn_vmem),
    )(qp, kp, vp, wo_g, bo)

    return result


# ---------------------------------------------------------------------------
# Pure-JAX reference (matches the PyTorch forward, dropout in eval mode).
# ---------------------------------------------------------------------------
def _reference_mha(q, k, v, params, *, num_heads):
    B, S, D = q.shape
    dk = D // num_heads

    def lin(x, w, b):
        return x @ w + b  # weights stored as [D_in, D_out]

    def split(x):
        return x.reshape(B, S, num_heads, dk).transpose(0, 2, 1, 3)  # [B,H,S,dk]

    qh = split(lin(q, params['wq'], params['bq']))
    kh = split(lin(k, params['wk'], params['bk']))
    vh = split(lin(v, params['wv'], params['bv']))

    scores = jnp.einsum('bhqd,bhkd->bhqk', qh, kh) / math.sqrt(dk)
    attn = jax.nn.softmax(scores, axis=-1)
    ctx = jnp.einsum('bhqk,bhkd->bhqd', attn, vh)
    ctx = ctx.transpose(0, 2, 1, 3).reshape(B, S, D)
    out = lin(ctx, params['wo'], params['bo'])
    return out, attn


def init_params(key, d_model):
    """Deterministic parameter init (weights pre-transposed: [D_in, D_out])."""
    keys = jax.random.split(key, 8)
    bound = 1.0 / math.sqrt(d_model)

    def w(k):
        return jax.random.uniform(k, (d_model, d_model), jnp.float32, -bound, bound)

    def b(k):
        return jax.random.uniform(k, (d_model,), jnp.float32, -bound, bound)

    return {
        'wq': w(keys[0]), 'bq': b(keys[1]),
        'wk': w(keys[2]), 'bk': b(keys[3]),
        'wv': w(keys[4]), 'bv': b(keys[5]),
        'wo': w(keys[6]), 'bo': b(keys[7]),
    }


if __name__ == "__main__":
    B, S, D, H = 2, 16, 32, 4

    key = jax.random.PRNGKey(0)
    kq, kk, kv_, kp = jax.random.split(key, 4)
    q = jax.random.normal(kq, (B, S, D), jnp.float32)
    k = jax.random.normal(kk, (B, S, D), jnp.float32)
    v = jax.random.normal(kv_, (B, S, D), jnp.float32)
    params = init_params(kp, D)

    ref_out, ref_attn = _reference_mha(q, k, v, params, num_heads=H)

    # 1) Module-faithful path: returns (output, attention_weights); f32 MXU
    #    operands, q-tiled grid, single KV tile (debug-only attention emission),
    #    exact softmax normalization for the emitted weights.
    out, attn = multi_head_attention(q, k, v, params, num_heads=H,
                                     return_attn=True, q_tile=8,
                                     mxu_dtype=jnp.float32)
    out = jax.block_until_ready(out)
    attn = jax.block_until_ready(attn)
    assert out.shape == (B, S, D)
    assert attn.shape == (B, H, S, S)
    assert jnp.allclose(out, ref_out, atol=2e-2, rtol=2e-2)
    assert jnp.allclose(attn, ref_attn, atol=2e-2, rtol=2e-2)

    # 2) Fast path: bf16 MXU operands, KV-tiled flash accumulation across
    #    multiple KV tiles, no attention-weights write-back.  (bf16 incurs a
    #    small expected precision loss vs the f32 reference -> 5e-2 tolerance.)
    out_fast = multi_head_attention(q, k, v, params, num_heads=H,
                                    return_attn=False, q_tile=8, kv_tile=8,
                                    mxu_dtype=jnp.bfloat16)
    out_fast = jax.block_until_ready(out_fast)
    assert out_fast.shape == (B, S, D)
    assert jnp.allclose(out_fast, ref_out, atol=5e-2, rtol=5e-2)

    print("KERNEL_OK")
</pallas_src>

<mosaic_0001>
module attributes {stable_mosaic.version = 11 : i64} {
  func.func @_qkv_proj_kernel(%arg0: i32, %arg1: i32, %arg2: memref<1x16x32xf32, #tpu.memory_space<vmem>>, %arg3: memref<1x16x32xf32, #tpu.memory_space<vmem>>, %arg4: memref<1x16x32xf32, #tpu.memory_space<vmem>>, %arg5: memref<32x32xf32, #tpu.memory_space<vmem>>, %arg6: memref<1x32xf32, #tpu.memory_space<vmem>>, %arg7: memref<32x32xf32, #tpu.memory_space<vmem>>, %arg8: memref<1x32xf32, #tpu.memory_space<vmem>>, %arg9: memref<32x32xf32, #tpu.memory_space<vmem>>, %arg10: memref<1x32xf32, #tpu.memory_space<vmem>>, %arg11: memref<1x16x32xf32, #tpu.memory_space<vmem>>, %arg12: memref<1x16x32xf32, #tpu.memory_space<vmem>>, %arg13: memref<1x16x32xf32, #tpu.memory_space<vmem>>) attributes {dimension_semantics = [#tpu.dimension_semantics<parallel>, #tpu.dimension_semantics<parallel>], iteration_bounds = array<i64: 2, 1>, scalar_prefetch = 0 : i64, scratch_operands = 0 : i64, tpu.core_type = #tpu.core_type<tc>, window_params = [{transform_indices = @transform_0, window_bounds = array<i64: 1, 16, 32>}, {transform_indices = @transform_1, window_bounds = array<i64: 1, 16, 32>}, {transform_indices = @transform_2, window_bounds = array<i64: 1, 16, 32>}, {pipeline_mode = #tpu.pipeline_mode<synchronous>, transform_indices = @transform_3, window_bounds = array<i64: 32, 32>}, {pipeline_mode = #tpu.pipeline_mode<synchronous>, transform_indices = @transform_4, window_bounds = array<i64: 1, 32>}, {pipeline_mode = #tpu.pipeline_mode<synchronous>, transform_indices = @transform_5, window_bounds = array<i64: 32, 32>}, {pipeline_mode = #tpu.pipeline_mode<synchronous>, transform_indices = @transform_6, window_bounds = array<i64: 1, 32>}, {pipeline_mode = #tpu.pipeline_mode<synchronous>, transform_indices = @transform_7, window_bounds = array<i64: 32, 32>}, {pipeline_mode = #tpu.pipeline_mode<synchronous>, transform_indices = @transform_8, window_bounds = array<i64: 1, 32>}, {transform_indices = @transform_9, window_bounds = array<i64: 1, 16, 32>}, {transform_indices = @transform_10, window_bounds = array<i64: 1, 16, 32>}, {transform_indices = @transform_11, window_bounds = array<i64: 1, 16, 32>}]} {
    %c0 = arith.constant 0 : index
    %c0_0 = arith.constant 0 : index
    %c0_1 = arith.constant 0 : index
    %0 = vector.load %arg2[%c0, %c0_0, %c0_1] : memref<1x16x32xf32, #tpu.memory_space<vmem>>, vector<1x16x32xf32>
    %1 = vector.shape_cast %0 : vector<1x16x32xf32> to vector<16x32xf32>
    %c0_2 = arith.constant 0 : index
    %c0_3 = arith.constant 0 : index
    %c0_4 = arith.constant 0 : index
    %2 = vector.load %arg3[%c0_2, %c0_3, %c0_4] : memref<1x16x32xf32, #tpu.memory_space<vmem>>, vector<1x16x32xf32>
    %3 = vector.shape_cast %2 : vector<1x16x32xf32> to vector<16x32xf32>
    %c0_5 = arith.constant 0 : index
    %c0_6 = arith.constant 0 : index
    %c0_7 = arith.constant 0 : index
    %4 = vector.load %arg4[%c0_5, %c0_6, %c0_7] : memref<1x16x32xf32, #tpu.memory_space<vmem>>, vector<1x16x32xf32>
    %5 = vector.shape_cast %4 : vector<1x16x32xf32> to vector<16x32xf32>
    %c0_8 = arith.constant 0 : index
    %c0_9 = arith.constant 0 : index
    %6 = vector.load %arg5[%c0_8, %c0_9] : memref<32x32xf32, #tpu.memory_space<vmem>>, vector<32x32xf32>
    %cst = arith.constant dense<0.000000e+00> : vector<16x32xf32>
    %7 = tpu.matmul %1, %6, %cst {dimension_numbers = #tpu.dot_dimension_numbers<[1], [0], [0], [1], [0, 0, 1, 1], [], []>} : vector<16x32xf32>, vector<32x32xf32>, vector<16x32xf32> -> vector<16x32xf32>
    %c0_10 = arith.constant 0 : index
    %c0_11 = arith.constant 0 : index
    %8 = vector.load %arg6[%c0_10, %c0_11] : memref<1x32xf32, #tpu.memory_space<vmem>>, vector<1x32xf32>
    %9 = vector.broadcast %8 : vector<1x32xf32> to vector<16x32xf32>
    %10 = arith.addf %7, %9 : vector<16x32xf32>
    %cst_12 = arith.constant 0.353553385 : f32
    %11 = vector.broadcast %cst_12 : f32 to vector<16x32xf32>
    %12 = arith.mulf %10, %11 : vector<16x32xf32>
    %c0_13 = arith.constant 0 : index
    %c0_14 = arith.constant 0 : index
    %c0_15 = arith.constant 0 : index
    %13 = vector.load %arg11[%c0_13, %c0_14, %c0_15] : memref<1x16x32xf32, #tpu.memory_space<vmem>>, vector<1x16x32xf32>
    %14 = vector.shape_cast %13 : vector<1x16x32xf32> to vector<16x32xf32>
    %15 = vector.shape_cast %12 : vector<16x32xf32> to vector<1x16x32xf32>
    tpu.vector_store %arg11[%c0_13, %c0_14, %c0_15], %15 {strides = array<i32>} : memref<1x16x32xf32, #tpu.memory_space<vmem>>, vector<1x16x32xf32>,
    %c0_16 = arith.constant 0 : index
    %c0_17 = arith.constant 0 : index
    %16 = vector.load %arg7[%c0_16, %c0_17] : memref<32x32xf32, #tpu.memory_space<vmem>>, vector<32x32xf32>
    %cst_18 = arith.constant dense<0.000000e+00> : vector<16x32xf32>
    %17 = tpu.matmul %3, %16, %cst_18 {dimension_numbers = #tpu.dot_dimension_numbers<[1], [0], [0], [1], [0, 0, 1, 1], [], []>} : vector<16x32xf32>, vector<32x32xf32>, vector<16x32xf32> -> vector<16x32xf32>
    %c0_19 = arith.constant 0 : index
    %c0_20 = arith.constant 0 : index
    %18 = vector.load %arg8[%c0_19, %c0_20] : memref<1x32xf32, #tpu.memory_space<vmem>>, vector<1x32xf32>
    %19 = vector.broadcast %18 : vector<1x32xf32> to vector<16x32xf32>
    %20 = arith.addf %17, %19 : vector<16x32xf32>
    %c0_21 = arith.constant 0 : index
    %c0_22 = arith.constant 0 : index
    %c0_23 = arith.constant 0 : index
    %21 = vector.load %arg12[%c0_21, %c0_22, %c0_23] : memref<1x16x32xf32, #tpu.memory_space<vmem>>, vector<1x16x32xf32>
    %22 = vector.shape_cast %21 : vector<1x16x32xf32> to vector<16x32xf32>
    %23 = vector.shape_cast %20 : vector<16x32xf32> to vector<1x16x32xf32>
    tpu.vector_store %arg12[%c0_21, %c0_22, %c0_23], %23 {strides = array<i32>} : memref<1x16x32xf32, #tpu.memory_space<vmem>>, vector<1x16x32xf32>,
    %c0_24 = arith.constant 0 : index
    %c0_25 = arith.constant 0 : index
    %24 = vector.load %arg9[%c0_24, %c0_25] : memref<32x32xf32, #tpu.memory_space<vmem>>, vector<32x32xf32>
    %cst_26 = arith.constant dense<0.000000e+00> : vector<16x32xf32>
    %25 = tpu.matmul %5, %24, %cst_26 {dimension_numbers = #tpu.dot_dimension_numbers<[1], [0], [0], [1], [0, 0, 1, 1], [], []>} : vector<16x32xf32>, vector<32x32xf32>, vector<16x32xf32> -> vector<16x32xf32>
    %c0_27 = arith.constant 0 : index
    %c0_28 = arith.constant 0 : index
    %26 = vector.load %arg10[%c0_27, %c0_28] : memref<1x32xf32, #tpu.memory_space<vmem>>, vector<1x32xf32>
    %27 = vector.broadcast %26 : vector<1x32xf32> to vector<16x32xf32>
    %28 = arith.addf %25, %27 : vector<16x32xf32>
    %c0_29 = arith.constant 0 : index
    %c0_30 = arith.constant 0 : index
    %c0_31 = arith.constant 0 : index
    %29 = vector.load %arg13[%c0_29, %c0_30, %c0_31] : memref<1x16x32xf32, #tpu.memory_space<vmem>>, vector<1x16x32xf32>
    %30 = vector.shape_cast %29 : vector<1x16x32xf32> to vector<16x32xf32>
    %31 = vector.shape_cast %28 : vector<16x32xf32> to vector<1x16x32xf32>
    tpu.vector_store %arg13[%c0_29, %c0_30, %c0_31], %31 {strides = array<i32>} : memref<1x16x32xf32, #tpu.memory_space<vmem>>, vector<1x16x32xf32>,
    return
  }
  func.func @transform_0(%arg0: i32, %arg1: i32) -> (i32, i32, i32) {
    %c0_i32 = arith.constant 0 : i32
    %c0_i32_0 = arith.constant 0 : i32
    return %arg0, %arg1, %c0_i32 : i32, i32, i32
  }
  func.func @transform_1(%arg0: i32, %arg1: i32) -> (i32, i32, i32) {
    %c0_i32 = arith.constant 0 : i32
    %c0_i32_0 = arith.constant 0 : i32
    return %arg0, %arg1, %c0_i32 : i32, i32, i32
  }
  func.func @transform_2(%arg0: i32, %arg1: i32) -> (i32, i32, i32) {
    %c0_i32 = arith.constant 0 : i32
    %c0_i32_0 = arith.constant 0 : i32
    return %arg0, %arg1, %c0_i32 : i32, i32, i32
  }
  func.func @transform_3(%arg0: i32, %arg1: i32) -> (i32, i32) {
    %c0_i32 = arith.constant 0 : i32
    %c0_i32_0 = arith.constant 0 : i32
    %c0_i32_1 = arith.constant 0 : i32
    return %c0_i32, %c0_i32_0 : i32, i32
  }
  func.func @transform_4(%arg0: i32, %arg1: i32) -> (i32, i32) {
    %c0_i32 = arith.constant 0 : i32
    %c0_i32_0 = arith.constant 0 : i32
    %c0_i32_1 = arith.constant 0 : i32
    return %c0_i32, %c0_i32_0 : i32, i32
  }
  func.func @transform_5(%arg0: i32, %arg1: i32) -> (i32, i32) {
    %c0_i32 = arith.constant 0 : i32
    %c0_i32_0 = arith.constant 0 : i32
    %c0_i32_1 = arith.constant 0 : i32
    return %c0_i32, %c0_i32_0 : i32, i32
  }
  func.func @transform_6(%arg0: i32, %arg1: i32) -> (i32, i32) {
    %c0_i32 = arith.constant 0 : i32
    %c0_i32_0 = arith.constant 0 : i32
    %c0_i32_1 = arith.constant 0 : i32
    return %c0_i32, %c0_i32_0 : i32, i32
  }
  func.func @transform_7(%arg0: i32, %arg1: i32) -> (i32, i32) {
    %c0_i32 = arith.constant 0 : i32
    %c0_i32_0 = arith.constant 0 : i32
    %c0_i32_1 = arith.constant 0 : i32
    return %c0_i32, %c0_i32_0 : i32, i32
  }
  func.func @transform_8(%arg0: i32, %arg1: i32) -> (i32, i32) {
    %c0_i32 = arith.constant 0 : i32
    %c0_i32_0 = arith.constant 0 : i32
    %c0_i32_1 = arith.constant 0 : i32
    return %c0_i32, %c0_i32_0 : i32, i32
  }
  func.func @transform_9(%arg0: i32, %arg1: i32) -> (i32, i32, i32) {
    %c0_i32 = arith.constant 0 : i32
    %c0_i32_0 = arith.constant 0 : i32
    return %arg0, %arg1, %c0_i32 : i32, i32, i32
  }
  func.func @transform_10(%arg0: i32, %arg1: i32) -> (i32, i32, i32) {
    %c0_i32 = arith.constant 0 : i32
    %c0_i32_0 = arith.constant 0 : i32
    return %arg0, %arg1, %c0_i32 : i32, i32, i32
  }
  func.func @transform_11(%arg0: i32, %arg1: i32) -> (i32, i32, i32) {
    %c0_i32 = arith.constant 0 : i32
    %c0_i32_0 = arith.constant 0 : i32
    return %arg0, %arg1, %c0_i32 : i32, i32, i32
  }
}

</mosaic_0001>

<bundles_post_ra>
// kernel: tpu_custom_call.1
= control target key start
LH: loop header
LB: loop body
LE: loop exit
PB: predicated region body
PF: predicated region fallthrough
CT: control target
= control target key end

     0   :  { %s1930_s0 = inlined_call_operand.hbm [shape: f32[2,16,32], index: 0, kind: input, shape index: {}]   ;;  %s1931_s1 = inlined_call_operand.hbm [shape: f32[2,16,32], index: 1, kind: input, shape index: {}]   ;;  %s1932_s2 = inlined_call_operand.hbm [shape: f32[2,16,32], index: 2, kind: input, shape index: {}]   ;;  %s1933_s3 = inlined_call_operand.hbm [shape: f32[32,32], index: 3, kind: input, shape index: {}]   ;;  %s1934_s4 = inlined_call_operand.vmem [shape: f32[1,32], index: 4, kind: input, shape index: {}]   ;;  %s1935_s5 = inlined_call_operand.hbm [shape: f32[32,32], index: 5, kind: input, shape index: {}]   ;;  %s1936_s6 = inlined_call_operand.vmem [shape: f32[1,32], index: 6, kind: input, shape index: {}]   ;;  %s1937_s7 = inlined_call_operand.hbm [shape: f32[32,32], index: 7, kind: input, shape index: {}]   ;;  %s1938_s8 = inlined_call_operand.vmem [shape: f32[1,32], index: 8, kind: input, shape index: {}]   ;;  %s1939_s9 = inlined_call_operand.hbm [shape: f32[2,16,32], index: 9, kind: output, shape index: {0}]   ;;  %s1940_s10 = inlined_call_operand.hbm [shape: f32[2,16,32], index: 10, kind: output, shape index: {1}]   ;;  %s1941_s11 = inlined_call_operand.hbm [shape: f32[2,16,32], index: 11, kind: output, shape index: {2}]  }
   0x1   :  { %1958 = sst [smem:[#allocation30_spill]] %s1931_s1 }
   0x2   :  { %1959 = sst [smem:[#allocation31_spill]] %s1933_s3 }
   0x3   :  { %1960 = sst [smem:[#allocation32_spill]] %s1935_s5 }
   0x4   :  { %1961 = sst [smem:[#allocation33_spill]] %s1937_s7 }
   0x5   :  { %1962 = sst [smem:[#allocation34_spill]] %s1939_s9 }
   0x6   :  { %1963 = sst [smem:[#allocation35_spill]] %s1941_s11 }
   0x7   :  { %17 = vsyncpa [#allocation3], 0 }
   0x8   :  { %19 = vsyncpa [#allocation3 + $0x1], 0 }
   0x9   :  { %20 = vsyncpa [#allocation6], 0 }
   0xa   :  { %22 = vsyncpa [#allocation6 + $0x1], 0 }
   0xb   :  { %23 = vsyncpa [#allocation9], 0 }
   0xc   :  { %24 = vsyncpa [#allocation12], 0 }
   0xd   :  { %25 = vsyncpa [#allocation4], 0 }
   0xe   :  { %27 = vsyncpa [#allocation4 + $0x1], 0 }
   0xf   :  { %28 = vsyncpa [#allocation15], 0 }
  0x10   :  { %30 = vsyncpa [#allocation15 + $0x1], 0  ;;  %s1594_s17 = smov 0   ;;  %s1596_s18 = smov 0  }
  0x11   :  { %s1598_s19 = smov 0   ;;  %s1600_s20 = smov 0  }
  0x12   :  { %s1602_s21 = smov 0   ;;  %s1604_s22 = smov 0  }
  0x13 LB: > { %1964 = sst [smem:[#allocation23_spill]] %s1505_s17  ;;  %s1625_s23 = sadd.s32 4294967295, %s1525_s22   ;;  %s1525_s22 = sphi %s1604_s22, %s36_s22   ;;  %s1521_s21 = sphi %s1602_s21, %s1994_s21   ;;  %s1517_s20 = sphi %s1600_s20, %s1998_s20   ;;  %s1513_s19 = sphi %s1598_s19, %s1997_s19   ;;  %s1509_s18 = sphi %s1596_s18, %s1996_s18   ;;  %s1505_s17 = sphi %s1594_s17, %s1995_s17  }
  0x14   : > { %1965 = sst [smem:[#allocation24_spill]] %s1521_s21  ;;  %s1942_s24 = sadd.s32 4294967294, %s1525_s22  }
  0x15   : > { %1966 = sst [smem:[#allocation25_spill]] %s1525_s22  ;;  %p70_p0 = scmp.ne.s32.totalorder %s1509_s18, %s1505_s17 }
  0x16   : > { %p71_p1 = scmp.eq.s32.totalorder %s1625_s23, 0  ;;  %p278_p2 = scmp.eq.s32.totalorder %s1625_s23, 1 }
  0x17   : > { %p284_p3 = scmp.eq.s32.totalorder %s1942_s24, 1  ;;  %p1020_p5 = scmp.ge.s32.totalorder %s1525_s22, 1 }
  0x18   : > { %p1636_p4 = por %p71_p1, %p70_p0  ;;  %p347_p7 = scmp.lt.s32.totalorder %s1525_s22, 3 }
  0x19   : > { %p1641_p6 = por %p284_p3, %p70_p0  ;;  %s1970_s3 = sld [smem:[#allocation31_spill]] }
  0x1a   : > { %p1649_p8 = pnand %p1020_p5, %p347_p7  ;;  %s1527_s12 = smov [#allocation8]  }
  0x1b   : > { %s1968_s26 = scalar_select %p1641_p6, 1, 0 }
  0x1c   : > { %p1095_p9 = pneg %p1649_p8  ;;  %s360_s13 = sshll.u32 %s1527_s12, 4  ;;  %s361_s13 = int_to_ptr.vmem [resolvable:$true] %s360_s13 }
  0x1d   : > { %1969 = sst [smem:[#allocation26_spill]] %s1968_s26  ;;  %p1024_p11 = scmp.ge.s32.totalorder %s1525_s22, 2 }
  0x1e   : > { %p1657_p10 = pnand %p1095_p9, %p71_p1  ;;  %s1943_s15 = smov 128  }
  0x1f   : > { %s358_s29 = sshll.u32 %s1970_s3, 4  ;;  %s1945_s16 = smov 8   ;;  %s359_s29 = int_to_ptr.hbm [resolvable:$true] %s358_s29 }
  0x20   : > { %1098 = dma.hbm_to_vmem [thread:$0]  (!%p1657_p10), %s359_s29, 512, %s361_s13, [#allocation9], %s1943_s15, %s1943_s15, %s1945_s16  }
  0x21   : > { %s48_s27 = sadd.s32 1, %s1521_s21  ;;  %s57_s28 = sadd.s32 1, %s1513_s19 }
  0x22   : > { %p50_p12 = scmp.ge.s32.totalorder %s48_s27, 2  ;;  %p64_p13 = scmp.ne.s32.totalorder %s1513_s19, %s1509_s18 }
  0x23   : > { %p65_p0 = scmp.eq.s32.totalorder %s1525_s22, 0  ;;  %p1128_p7 = scmp.lt.s32.totalorder %s1525_s22, 2 }
  0x24   : > { %s2000_s27 = smov (%p50_p12, %s48_s27), 0  ;;  %p1676_p5 = por %p278_p2, %p64_p13 }
  0x25   : > { %1973 = sst [smem:[#allocation27_spill]] %s2000_s27  ;;  %p66_p3 = por %p65_p0, %p64_p13 }
  0x26   : > { %s1974_s12 = scalar_select %p1676_p5, 1, 0 }
  0x27   : > { %s52_s24 = ssub.s32 %s1521_s21, %s2000_s27  ;;  %s1952_s3 = sand.u32 1, %s1513_s19  }
  0x28   : > { %1975 = sst [smem:[#allocation28_spill]] %s1974_s12  ;;  %p55_p9 = scmp.eq.s32.totalorder %s52_s24, 0 }
  0x29   : > { %s1686_s29 = sshll.u32 %s1952_s3, 4  ;;  %s1689_s13 = sshll.u32 %s1521_s21, 4 }
  0x2a   : > { %s1692_s15 = scalar_select %p55_p9, %s1513_s19, %s57_s28  }
  0x2b   : > { %p1694_p12 = pnand %p1128_p7, %p66_p3  ;;  %s435_s26 = sand.u32 1, %s1525_s22  }
  0x2c   : > { %1976 = sst [smem:[#allocation29_spill]] %s1692_s15  ;;  %s439_s3 = scalar_lea.vmem [#allocation5], %s1686_s29 }
  0x2d   : > { %s1978_s1 = sld [smem:[#allocation30_spill]]  ;;  %s449_s11 = sshll.u32 %s439_s3, 4  ;;  %s450_s11 = int_to_ptr.vmem [resolvable:$true] %s449_s11 }
  0x2e   : > { %s1704_s28 = scalar_lea.sflag [#allocation6], %s435_s26  ;;  %s1979_s21 = smov 8  }
  0x2f   : > { %s1980_s15 = smov 128   ;;  %s1981_s5 = sld [smem:[#allocation32_spill]] }
  0x30   : > { %s1530_s27 = smov [#allocation10]   ;;  %s1982_s7 = sld [smem:[#allocation33_spill]] }
  0x31   : > { %s377_s3 = sshll.u32 %s1530_s27, 4  ;;  %s1531_s9 = smov [#allocation11]   ;;  %s378_s3 = int_to_ptr.vmem [resolvable:$true] %s377_s3 }
  0x32   : > { %s415_s27 = scalar_lea.vmem [#allocation2], %s1686_s29 }
  0x33   : > { %s446_s24 = scalar_lea.hbm %s1978_s1, %s1689_s13 }
  0x34   : > { %s447_s12 = sshll.u32 %s446_s24, 4  ;;  %s425_s24 = sshll.u32 %s415_s27, 4  ;;  %s448_s12 = int_to_ptr.hbm [resolvable:$true] %s447_s12  ;;  %s426_s24 = int_to_ptr.vmem [resolvable:$true] %s425_s24 }
  0x35   : > { %1111 = dma.hbm_to_vmem [thread:$0]  (!%p1694_p12), %s448_s12, 256, %s450_s11, %s1704_s28, %s1980_s15, %s1980_s15, %s1979_s21  }
  0x36   : > { %s375_s17 = sshll.u32 %s1981_s5, 4  ;;  %s392_s26 = sshll.u32 %s1982_s7, 4  ;;  %s376_s17 = int_to_ptr.hbm [resolvable:$true] %s375_s17  ;;  %s393_s26 = int_to_ptr.hbm [resolvable:$true] %s392_s26 }
  0x37   : > { %1101 = dma.hbm_to_vmem [thread:$0]  (!%p1657_p10), %s376_s17, 512, %s378_s3, [#allocation9], %s1980_s15, %s1980_s15, %s1979_s21  }
  0x38   : > { %s394_s11 = sshll.u32 %s1531_s9, 4  ;;  %s422_s12 = scalar_lea.hbm %s1930_s0, %s1689_s13  ;;  %s395_s11 = int_to_ptr.vmem [resolvable:$true] %s394_s11 }
  0x39   : > { %1104 = dma.hbm_to_vmem [thread:$0]  (!%p1657_p10), %s393_s26, 512, %s395_s11, [#allocation12], %s1980_s15, %s1980_s15, %s1979_s21  }
  0x3a   : > { %s423_s5 = sshll.u32 %s422_s12, 4  ;;  %s1983_s17 = sand.u32 1, %s1513_s19   ;;  %s424_s5 = int_to_ptr.hbm [resolvable:$true] %s423_s5 }
  0x3b   : > { %s412_s3 = scalar_lea.sflag [#allocation3], %s1983_s17  ;;  %s470_s26 = scalar_lea.hbm %s1932_s2, %s1689_s13 }
  0x3c   : > { %1108 = dma.hbm_to_vmem [thread:$0]  (!%p1694_p12), %s424_s5, 256, %s426_s24, %s412_s3, %s1980_s15, %s1980_s15, %s1979_s21  }
  0x3d   : > { %s463_s11 = scalar_lea.vmem [#allocation7], %s1686_s29  ;;  %s471_s1 = sshll.u32 %s470_s26, 4  ;;  %s472_s1 = int_to_ptr.hbm [resolvable:$true] %s471_s1 }
  0x3e   : > { %s473_s7 = sshll.u32 %s463_s11, 4  ;;  %485 = sbr.rel (%p1649_p8) target bundleno = 250 (0xfa), region = 56  ;;  %s474_s7 = int_to_ptr.vmem [resolvable:$true] %s473_s7 }
  0x3f   : > { %1114 = dma.hbm_to_vmem [thread:$0]  (!%p1694_p12), %s472_s1, 256, %s474_s7, %s1704_s28, %s1980_s15, %s1980_s15, %s1979_s21  }
  0x40   : > { %s1754_s5 = sand.u32 (!%p1649_p8), 1, %s1509_s18  }
  0x41   : > { %s1757_s13 = sshll.u32 (!%p1649_p8), %s1754_s5, 4  ;;  %s488_s29 = scalar_lea.sflag (!%p1649_p8), [#allocation3], %s1754_s5 }
  0x42   : > { %s491_s22 = scalar_lea.vmem (!%p1649_p8), [#allocation2], %s1757_s13 }
  0x43   : > { %1480 = dma.done.wait (%p1636_p4), %s488_s29, 256  }
  0x44   : > { %1482 = vsyncadd (%p1636_p4), %s488_s29, 4294967040  ;;  %s497_s7 = sand.u32 1, %s1625_s23   ;;  %s501_s30 = scalar_lea.vmem [#allocation5], %s1757_s13 }
  0x45   : > { %s498_s21 = scalar_lea.sflag [#allocation6], %s497_s7 }
  0x46   : > { %1484 = dma.done.wait (%p1636_p4), %s498_s21, 512  }
  0x47   : > { %1486 = vsyncadd (%p1636_p4), %s498_s21, 4294966784  ;;  %s511_s15 = scalar_lea.vmem [#allocation7], %s1757_s13 }
  0x48   : > { %1488 = dma.done.wait (%p71_p1), [#allocation9], 1024  }
  0x49   : > { %1490 = vsyncadd (%p71_p1), [#allocation9], 4294966272 }
  0x4a   : > { %1492 = dma.done.wait (%p71_p1), [#allocation12], 512  }
  0x4b   : > { %1494 = vsyncadd (%p71_p1), [#allocation12], 4294966784  ;;  %v682_v0 = vld [vmem:[#allocation11 + $0x18] sm:$0xff]  ;;  %v681_v1 = vld [vmem:[#allocation11 + $0x10] sm:$0xff]  ;;  %vm606_vm0 = vcmask 261120   ;;  %s578_s27 = scalar_lea.vmem [#allocation14], %s1757_s13 }
  0x4c   : > { %705 = vmatpush.msra.mxu2 %v682_v0  ;;  %v643_v2 = vld [vmem:[#allocation10 + $0x18] sm:$0xff]  ;;  %v680_v4 = vld [vmem:[#allocation11 + $0x8] sm:$0xff]  ;;  %v642_v5 = vld [vmem:[#allocation10 + $0x10] sm:$0xff]  ;;  %s762_s24 = sshll.u32 %s578_s27, 4  ;;  %s1064_s17 = sshll.u32 %s1517_s20, 4  ;;  %s1812_s24 = int_to_ptr.vmem [resolvable:$true] %s762_s24 }
  0x4d   : > { %v601_v3 = vld [vmem:[#allocation8 + $0x18] sm:$0xff]  ;;  %666 = vmatpush.msra.mxu1 %v643_v2  ;;  %v600_v6 = vld [vmem:[#allocation8 + $0x10] sm:$0xff]  ;;  %v641_v7 = vld [vmem:[#allocation10 + $0x8] sm:$0xff]  ;;  %s761_s11 = scalar_lea.hbm %s1940_s10, %s1064_s17  ;;  %s1818_s1 = scalar_lea.vmem [#allocation16], %s1757_s13 }
  0x4e   : > { %1067 = vmatpush.msra.mxu3 %v601_v3  ;;  %706 = vmatpush.msra.mxu2 %v681_v1  ;;  %v599_v8 = vld [vmem:[#allocation8 + $0x8] sm:$0xff]  ;;  %v679_v9 = vld [vmem:[#allocation11] sm:$0xff]  ;;  %s781_s20 = sshll.u32 %s1818_s1, 4  ;;  %s1984_s21 = sld [smem:[#allocation34_spill]]  ;;  %s1842_s20 = int_to_ptr.vmem [resolvable:$true] %s781_s20 }
  0x4f   : > { %625 = vmatpush.msra.mxu0 %v601_v3  ;;  %667 = vmatpush.msra.mxu1 %v642_v5  ;;  %v596_v10 = vld [vmem:[%s511_s15] sm:$0xff]  ;;  %v593_v14 = vld [vmem:[%s491_s22 + $0x8] sm:$0xff]  ;;  %s571_s25 = scalar_lea.vmem [#allocation13], %s1757_s13  ;;  %s1986_s3 = sld [smem:[#allocation35_spill]] }
  0x50   : > { %1068 = vmatpush.msra.mxu3 %v600_v6  ;;  %707 = vmatpush.msra.mxu2 %v680_v4  ;;  %v640_v11 = vld [vmem:[#allocation10] sm:$0xff]  ;;  %v597_v16 = vld [vmem:[%s511_s15 + $0x8] sm:$0xff]  ;;  %s743_s16 = sshll.u32 %s571_s25, 4  ;;  %s1829_s9 = sshll.u32 %s761_s11, 4  ;;  %s765_s9 = int_to_ptr.hbm [resolvable:$true] %s1829_s9  ;;  %s1839_s16 = int_to_ptr.vmem [resolvable:$true] %s743_s16 }
  0x51   : > { %v598_v12 = vld [vmem:[#allocation8] sm:$0xff]  ;;  %626 = vmatpush.msra.mxu0 %v600_v6  ;;  %668 = vmatpush.msra.mxu1 %v641_v7  ;;  %v595_v17 = vld [vmem:[%s501_s30 + $0x8] sm:$0xff]  ;;  %s1385_s11 = sshra.s32 %s765_s9, 4  ;;  %s1386_s11 = int_to_ptr.hbm [resolvable:$true] %s1385_s11 }
  0x52   : > { %1069 = vmatpush.msra.mxu3 %v599_v8  ;;  %v594_v13 = vld [vmem:[%s501_s30] sm:$0xff]  ;;  %708 = vmatpush.msra.mxu2 %v679_v9  ;;  %p1392_p8 = scmp.lt.s32.totalorder %s1386_s11, %s1940_s10 }
  0x53   : > { %627 = vmatpush.msra.mxu0 %v599_v8  ;;  %1048 = vmatmul.msk.f32.vlgmr.msra.gmra.mxu2 %vm606_vm0, %v596_v10  ;;  %v592_v15 = vld [vmem:[%s491_s22] sm:$0xff]  ;;  %s1387_s22 = scalar_lea.hbm %s1386_s11, 16 }
  0x54   : > { %669 = vmatpush.msra.mxu1 %v640_v11  ;;  %1070 = vmatpush.msra.mxu3 %v598_v12  ;;  %v1188_v18 = vld [vmem:[%s1936_s6] ss:$0 sm:$0xff]  ;;  %s1985_s30 = smov %s1984_s21  ;;  %s742_s15 = scalar_lea.hbm %s1984_s21, %s1064_s17 }
  0x55   : > { %1046 = vmatmul.msk.f32.vlgmr.msra.gmra.mxu1 %vm606_vm0, %v594_v13  ;;  %1045 = vmatmul.msk.f32.vlgmr.msra.gmra.mxu3 %vm606_vm0, %v593_v14  ;;  %v1190_v19 = vld [vmem:[%s1934_s4] ss:$0 sm:$0xff]  ;;  %s780_s14 = scalar_lea.hbm %s1986_s3, %s1064_s17  ;;  %s1833_s26 = sshll.u32 %s742_s15, 4  ;;  %s746_s26 = int_to_ptr.hbm [resolvable:$true] %s1833_s26 }
  0x56   : > { %628 = vmatpush.msra.mxu0 %v598_v12  ;;  %v1189_v22 = vld [vmem:[%s1938_s8] ss:$0 sm:$0xff]  ;;  %s1835_s29 = sshll.u32 %s780_s14, 4  ;;  %s1848_s17 = scalar_lea.sflag [#allocation15], %s497_s7  ;;  %s784_s29 = int_to_ptr.hbm [resolvable:$true] %s1835_s29 }
  0x57   : > { %1044 = vmatmul.msk.f32.vlgmr.msra.gmra.mxu0 %vm606_vm0, %v592_v15  ;;  %p1388_p1 = scmp.ne.s32.totalorder %s1386_s11, %s1387_s22  ;;  %s1391_s15 = scalar_lea.hbm %s1940_s10, 32 }
  0x58   : > { %p1393_p10 = scmp.lt.s32.totalorder %s1391_s15, %s1387_s22 }
  0x59   : > { %p1389_p2 = pnand %p1388_p1, %p1676_p5 }
  0x5a   : > { %p1394_p13 = por %p1393_p10, %p1392_p8 }
  0x5b   : > { %1049 = vmatmul.msk.f32.gmra.mxu2 %vm606_vm0, %v597_v16  ;;  %p1390_p4 = pneg %p1389_p2 }
  0x5d   : > { %1047 = vmatmul.msk.f32.gmra.mxu1 %vm606_vm0, %v595_v17  ;;  %p1395_p0 = pnand %p1394_p13, %p1390_p4 }
  0xd2   : > { %v671_v20 = vpop.f32.mrf.mxu1 }
  0xd3   : > { %v672_v21 = vadd.f32 %v1188_v18, %v671_v20 }
  0xd4   : > { %v630_v23 = vpop.f32.mrf.mxu0 }
  0xd5   : > { %677 = vst.msk [vmem:[%s578_s27] sm:$0xff] %vm606_vm0, %v672_v21  ;;  %v631_v24 = vadd.f32 %v1190_v19, %v630_v23 }
  0xd6   : > { %v710_v25 = vpop.f32.mrf.mxu2 }
  0xd7   : > { %v636_v26 = vmul.f32 0.35355338, %v631_v24  ;;  %v711_v27 = vadd.f32 %v1189_v22, %v710_v25 }
  0xd8   : > { %v633_v28 = vpop.f32.mrf.mxu3 }
  0xd9   : > { %638 = vst.msk [vmem:[%s571_s25] sm:$0xff] %vm606_vm0, %v636_v26  ;;  %v634_v29 = vadd.f32 %v1190_v19, %v633_v28 }
  0xda   : > { %716 = vst.msk [vmem:[%s1818_s1] sm:$0xff] %vm606_vm0, %v711_v27  ;;  %v674_v30 = vpop.f32.mrf.mxu1 }
  0xdb   : > { %v675_v31 = vadd.f32 %v1188_v18, %v674_v30  ;;  %v637_v32 = vmul.f32 0.35355338, %v634_v29 }
  0xdd   : > { %678 = vst.msk [vmem:[%s578_s27 + $0x8] sm:$0xff] %vm606_vm0, %v675_v31 }
  0xde   : > { %639 = vst.msk [vmem:[%s571_s25 + $0x8] sm:$0xff] %vm606_vm0, %v637_v32  ;;  %v713_v33 = vpop.f32.mrf.mxu2 }
  0xdf   : > { %1398 = shalt.err (!%p1395_p0)
}
  0xe0   : > { %s1532_s23 = smov 128   ;;  %s1533_s7 = smov 8   ;;  %v714_v34 = vadd.f32 %v1189_v22, %v713_v33 }
  0xe1   : > { %1090 = dma.vmem_to_hbm [thread:$0]  (%p1676_p5), %s1812_s24, 256, %s765_s9, %s1848_s17, %s1532_s23, %s1532_s23, %s1533_s7  }
  0xe2   : > { %s719_s25 = scalar_lea.sflag [#allocation4], %s1754_s5  ;;  %s1413_s14 = sshra.s32 %s746_s26, 4  ;;  %s1414_s14 = int_to_ptr.hbm [resolvable:$true] %s1413_s14 }
  0xe3   : > { %s1415_s11 = scalar_lea.hbm %s1414_s14, 16  ;;  %s1419_s21 = scalar_lea.hbm %s1985_s30, 32 }
  0xe4   : > { %p1416_p3 = scmp.ne.s32.totalorder %s1414_s14, %s1415_s11  ;;  %p1420_p12 = scmp.lt.s32.totalorder %s1414_s14, %s1985_s30 }
  0xe5   : > { %p1421_p1 = scmp.lt.s32.totalorder %s1419_s21, %s1415_s11 }
  0xe6   : > { %p1417_p7 = pnand %p1416_p3, %p1676_p5 }
  0xe7   : > { %p1422_p2 = por %p1421_p1, %p1420_p12 }
  0xe8   : > { %p1418_p9 = pneg %p1417_p7 }
  0xea   : > { %p1423_p4 = pnand %p1422_p2, %p1418_p9 }
  0xec   : > { %1426 = shalt.err (!%p1423_p4)
}
  0xed   : > { %1089 = dma.vmem_to_hbm [thread:$0]  (%p1676_p5), %s1839_s16, 256, %s746_s26, %s719_s25, %s1532_s23, %s1532_s23, %s1533_s7  }
  0xee   : > { %717 = vst.msk [vmem:[%s1818_s1 + $0x8] sm:$0xff] %vm606_vm0, %v714_v34  ;;  %s1441_s5 = sshra.s32 %s784_s29, 4  ;;  %s1447_s14 = scalar_lea.hbm %s1986_s3, 32  ;;  %s1442_s5 = int_to_ptr.hbm [resolvable:$true] %s1441_s5 }
  0xef   : > { %s1443_s24 = scalar_lea.hbm %s1442_s5, 16  ;;  %p1448_p0 = scmp.lt.s32.totalorder %s1442_s5, %s1986_s3 }
  0xf0   : > { %p1444_p8 = scmp.ne.s32.totalorder %s1442_s5, %s1443_s24  ;;  %p1449_p3 = scmp.lt.s32.totalorder %s1447_s14, %s1443_s24 }
  0xf2   : > { %p1445_p10 = pnand %p1444_p8, %p1676_p5  ;;  %p1450_p7 = por %p1449_p3, %p1448_p0 }
  0xf4   : > { %p1446_p13 = pneg %p1445_p10 }
  0xf6   : > { %p1451_p9 = pnand %p1450_p7, %p1446_p13 }
  0xf8   : > { %1454 = shalt.err (!%p1451_p9)
}
  0xf9   : > { %1091 = dma.vmem_to_hbm [thread:$0]  (%p1676_p5), %s1842_s20, 256, %s784_s29, %s1848_s17, %s1532_s23, %s1532_s23, %s1533_s7  }
  0xfa PF: > { %s1988_s1 = sld [smem:[#allocation23_spill]]  ;;  %p1116_p12 = pnand %p1024_p11, %p1641_p6 }
  0xfb   : > { %s1990_s26 = sld [smem:[#allocation25_spill]] }
  0xfc   : > { %p1117_p1 = pneg %p1116_p12 }
 0x100   : > { %s798_s25 = sand.u32 1, %s1988_s1  }
 0x101   : > { %s799_s27 = scalar_lea.sflag [#allocation4], %s798_s25 }
 0x102   : > { %1496 = dma.done.wait (%p1117_p1), %s799_s27, 256  }
 0x103   : > { %1498 = vsyncadd (%p1117_p1), %s799_s27, 4294967040  ;;  %s1991_s13 = sadd.s32 4294967294, %s1990_s26  }
 0x104   : > { %s808_s21 = sand.u32 1, %s1991_s13  }
 0x105   : > { %s809_s15 = scalar_lea.sflag [#allocation15], %s808_s21 }
 0x106   : > { %1500 = dma.done.wait (%p1117_p1), %s809_s15, 512  }
 0x107   : > { %1502 = vsyncadd (%p1117_p1), %s809_s15, 4294966784  ;;  %s36_s22 = sadd.s32 1, %s1990_s26   ;;  %s1992_s20 = sld [smem:[#allocation29_spill]] }
 0x108   : > { %p33_p5 = scmp.ge.s32.totalorder %s36_s22, 4   ;;  %s1993_s29 = sld [smem:[#allocation24_spill]] }
 0x109   : > { %s1994_s21 = sld [smem:[#allocation27_spill]]  ;;  %s1995_s17 = smov %s1509_s18 }
 0x10a   : > { %s1996_s18 = smov %s1513_s19  ;;  %35 = sbr.rel (!%p33_p5) target bundleno = 19 (0x13), region = 169 }
 0x10d   : > { %s1997_s19 = smov %s1992_s20 }
 0x10e   : > { %s1998_s20 = smov %s1993_s29 }
 0x10f   :  { %825 = vsyncpa [#allocation3], 1 }
 0x110   :  { %827 = vsyncpa [#allocation3 + $0x1], 1 }
 0x111   :  { %828 = vsyncpa [#allocation6], 1 }
 0x112   :  { %830 = vsyncpa [#allocation6 + $0x1], 1 }
 0x113   :  { %831 = vsyncpa [#allocation9], 1 }
 0x114   :  { %832 = vsyncpa [#allocation12], 1 }
 0x115   :  { %833 = vsyncpa [#allocation4], 1 }
 0x116   :  { %835 = vsyncpa [#allocation4 + $0x1], 1 }
 0x117   :  { %836 = vsyncpa [#allocation15], 1 }
 0x118   :  { %838 = vsyncpa [#allocation15 + $0x1], 1 }

</bundles_post_ra>
